<compile_context>
chip_gen: v7x
topology: tpu7x:2x2x1
jax: 0.10.0
libtpu: 0.0.40
codegen_flags: <defaults>
</compile_context>

<pallas_src>
import functools

import jax
import jax.numpy as jnp
from jax.experimental import pallas as pl
from jax.experimental.pallas import tpu as pltpu


def _sum_all(x):
    """Full reduction of a 2-D tile to a (1, 1) slab (two single-axis XLU reduces)."""
    return jnp.sum(jnp.sum(x, axis=1, keepdims=True), axis=0, keepdims=True)


def _self_attention_kernel(xg_ref, wblk_ref, bias_ref, out_ref, *, B, D, Gt):
    # xg_ref:   (Gt, B*D, P) f32 -- Gt independent problems; row b*D+c of problem t
    #                               holds x[t, b, c, :] (P = H*W on the lane axis).
    # wblk_ref: (B*D, B*D)   f32 -- block-diagonal 1x1-conv weight (one DxD block per
    #                               batch element); resident across the whole grid.
    # bias_ref: (B*D, 1)     f32 -- conv bias, one value per output row.
    # out_ref:  (Gt, B*D, P) f32 -- attn_output rows; lane-dense (8,128)-aligned stores.
    f32 = jnp.float32
    w_blk = wblk_ref[...]                                   # (BD, BD)
    bias = bias_ref[...]                                    # (BD, 1)

    for t in range(Gt):                                     # static unroll over problems
        xg = xg_ref[t]                                      # (BD, P)

        # -- 1x1 conv for all batches: one MXU matmul + one VPU bias add -------------
        qg = jnp.dot(w_blk, xg, preferred_element_type=f32) + bias        # (BD, P)

        # Per-batch row blocks (static, sublane-aligned slices; D % 8 == 0).
        q_blk = [qg[b * D:(b + 1) * D, :] for b in range(B)]
        v_blk = [xg[b * D:(b + 1) * D, :] for b in range(B)]

        # -- logits S[b, k] = <q_b, q_k> over all D*P elems (VPU mult + XLU reduce) --
        logits = [[None] * B for _ in range(B)]
        for b in range(B):
            for k in range(b, B):
                s_bk = _sum_all(q_blk[b] * q_blk[k])        # (1, 1)
                logits[b][k] = s_bk
                logits[k][b] = s_bk                         # symmetric since k == q

        # -- row-wise softmax + A @ V as an unrolled VPU weighted sum -----------------
        for b in range(B):
            row = logits[b]
            m = row[0]
            for k in range(1, B):
                m = jnp.maximum(m, row[k])
            e = [jnp.exp(row[k] - m) for k in range(B)]     # (1, 1) each (EUP)
            denom = e[0]
            for k in range(1, B):
                denom = denom + e[k]
            inv = pl.reciprocal(denom, approx=False)        # exact, per review note
            acc = (e[0] * inv) * v_blk[0]                   # (1,1) broadcasts to (D, P)
            for k in range(1, B):
                acc = acc + (e[k] * inv) * v_blk[k]
            out_ref[t, b * D:(b + 1) * D, :] = acc          # (D, 256) lane-dense store


def make_params(conv_w, conv_b, B):
    """Init-time prep (hoisted out of the per-call path): block-diagonal 1x1-conv
    weight (B copies of W on the diagonal) and the bias as a (B*D, 1) column."""
    conv_w = conv_w.astype(jnp.float32)
    conv_b = conv_b.astype(jnp.float32)
    w_blk = jnp.kron(jnp.eye(B, dtype=jnp.float32), conv_w)        # (BD, BD)
    bias_col = jnp.tile(conv_b[:, None], (B, 1))                   # (BD, 1)
    return w_blk, bias_col


def self_attention_forward_batched(x_gbchw, w_blk, bias_col, *, problems_per_step=4):
    """x_gbchw: (G, B, D, H, W) -- G independent SelfAttentionLayer forwards in one
    gridded, pipelined pallas_call."""
    G, B, D, H, W = x_gbchw.shape
    P = H * W
    BD = B * D

    # Largest divisor of G that is <= problems_per_step (avoids padding HLOs).
    Gt = 1
    for cand in range(min(problems_per_step, G), 0, -1):
        if G % cand == 0:
            Gt = cand
            break

    xg = x_gbchw.reshape(G, BD, P).astype(jnp.float32)

    out = pl.pallas_call(
        functools.partial(_self_attention_kernel, B=B, D=D, Gt=Gt),
        out_shape=jax.ShapeDtypeStruct((G, BD, P), jnp.float32),
        grid=(G // Gt,),
        in_specs=[
            pl.BlockSpec((Gt, BD, P), lambda g: (g, 0, 0)),   # per-step problem block
            pl.BlockSpec((BD, BD), lambda g: (0, 0)),         # resident weight
            pl.BlockSpec((BD, 1), lambda g: (0, 0)),          # resident bias
        ],
        out_specs=pl.BlockSpec((Gt, BD, P), lambda g: (g, 0, 0)),
        compiler_params=pltpu.CompilerParams(
            # Independent problems: shard the grid across both TensorCores on v7x.
            dimension_semantics=("parallel",),
        ),
    )(xg, w_blk, bias_col)
    return out.reshape(G, B, D, H, W)


def self_attention_forward(x_nchw, w_blk, bias_col):
    """Single SelfAttentionLayer.forward: x_nchw (B, D, H, W)."""
    return self_attention_forward_batched(x_nchw[None], w_blk, bias_col)[0]


def reference_forward(x_nchw, conv_w, conv_b):
    """Pure-JAX reference mirroring the PyTorch module."""
    B = x_nchw.shape[0]
    q = jnp.einsum('oc,bchw->bohw', conv_w, x_nchw) + conv_b[None, :, None, None]
    qf = q.reshape(B, -1)
    vf = x_nchw.reshape(B, -1)
    s = qf @ qf.T
    a = jax.nn.softmax(s, axis=-1)
    return (a @ vf).reshape(x_nchw.shape)


if __name__ == "__main__":
    B, D, H, W = 2, 8, 16, 16
    G = 8                                   # independent problems for the gridded path

    key = jax.random.PRNGKey(0)
    kx, kxg, kw, kb, ksim = jax.random.split(key, 5)

    x = jax.random.normal(kx, (B, D, H, W), dtype=jnp.float32)
    x_batch = jax.random.normal(kxg, (G, B, D, H, W), dtype=jnp.float32)
    # Conv2d(D, D, kernel_size=1): weight (D, D, 1, 1) stored as (D, D); bias (D,)
    conv_w = jax.random.normal(kw, (D, D), dtype=jnp.float32) * 0.02
    conv_b = jax.random.normal(kb, (D,), dtype=jnp.float32) * 0.1
    # TODO(synk): similarity_matrix is an nn.Parameter in __init__ but is never used
    # in forward(); it is created here for parameter parity only.
    similarity_matrix = jax.random.normal(ksim, (D, D), dtype=jnp.float32)

    # Init-time param prep (hoisted out of the per-call path, per review).
    w_blk, bias_col = make_params(conv_w, conv_b, B)

    # Single forward (the module's exact semantics).
    out = jax.block_until_ready(self_attention_forward(x, w_blk, bias_col))
    ref = reference_forward(x, conv_w, conv_b)
    assert out.shape == x.shape and out.dtype == jnp.float32
    assert jnp.allclose(out, ref, rtol=1e-4, atol=1e-4), "single-problem mismatch"

    # Batched: G independent forwards in ONE gridded, pipelined pallas_call
    # (and 2-TensorCore sharded on v7x via dimension_semantics="parallel").
    out_b = jax.block_until_ready(
        self_attention_forward_batched(x_batch, w_blk, bias_col, problems_per_step=4))
    ref_b = jax.vmap(lambda xi: reference_forward(xi, conv_w, conv_b))(x_batch)
    assert out_b.shape == x_batch.shape
    assert jnp.allclose(out_b, ref_b, rtol=1e-4, atol=1e-4), "batched mismatch"

    print("KERNEL_OK")
</pallas_src>

<mosaic_0001>
module attributes {stable_mosaic.version = 11 : i64} {
  func.func @_self_attention_kernel(%arg0: i32, %arg1: memref<1x16x256xf32, #tpu.memory_space<vmem>>, %arg2: memref<16x16xf32, #tpu.memory_space<vmem>>, %arg3: memref<16x1xf32, #tpu.memory_space<vmem>>, %arg4: memref<1x16x256xf32, #tpu.memory_space<vmem>>) attributes {dimension_semantics = [#tpu.dimension_semantics<parallel>], iteration_bounds = array<i64: 1>, scalar_prefetch = 0 : i64, scratch_operands = 0 : i64, tpu.core_type = #tpu.core_type<tc>, window_params = [{transform_indices = @transform_0, window_bounds = array<i64: 1, 16, 256>}, {pipeline_mode = #tpu.pipeline_mode<synchronous>, transform_indices = @transform_1, window_bounds = array<i64: 16, 16>}, {pipeline_mode = #tpu.pipeline_mode<synchronous>, transform_indices = @transform_2, window_bounds = array<i64: 16, 1>}, {transform_indices = @transform_3, window_bounds = array<i64: 1, 16, 256>}]} {
    %c0 = arith.constant 0 : index
    %c0_0 = arith.constant 0 : index
    %0 = vector.load %arg2[%c0, %c0_0] : memref<16x16xf32, #tpu.memory_space<vmem>>, vector<16x16xf32>
    %c0_1 = arith.constant 0 : index
    %c0_2 = arith.constant 0 : index
    %1 = vector.load %arg3[%c0_1, %c0_2] : memref<16x1xf32, #tpu.memory_space<vmem>>, vector<16x1xf32>
    %c0_3 = arith.constant 0 : index
    %c0_4 = arith.constant 0 : index
    %c0_5 = arith.constant 0 : index
    %2 = vector.load %arg1[%c0_3, %c0_4, %c0_5] : memref<1x16x256xf32, #tpu.memory_space<vmem>>, vector<1x16x256xf32>
    %3 = vector.shape_cast %2 : vector<1x16x256xf32> to vector<16x256xf32>
    %cst = arith.constant dense<0.000000e+00> : vector<16x256xf32>
    %4 = tpu.matmul %0, %3, %cst {dimension_numbers = #tpu.dot_dimension_numbers<[1], [0], [0], [1], [0, 0, 1, 1], [], []>} : vector<16x16xf32>, vector<16x256xf32>, vector<16x256xf32> -> vector<16x256xf32>
    %5 = vector.broadcast %1 : vector<16x1xf32> to vector<16x256xf32>
    %6 = arith.addf %4, %5 : vector<16x256xf32>
    %7 = vector.extract_strided_slice %6 {offsets = [0, 0], sizes = [8, 256], strides = [1, 1]} : vector<16x256xf32> to vector<8x256xf32>
    %8 = vector.extract_strided_slice %6 {offsets = [8, 0], sizes = [8, 256], strides = [1, 1]} : vector<16x256xf32> to vector<8x256xf32>
    %9 = vector.extract_strided_slice %3 {offsets = [0, 0], sizes = [8, 256], strides = [1, 1]} : vector<16x256xf32> to vector<8x256xf32>
    %10 = vector.extract_strided_slice %3 {offsets = [8, 0], sizes = [8, 256], strides = [1, 1]} : vector<16x256xf32> to vector<8x256xf32>
    %11 = arith.mulf %7, %7 : vector<8x256xf32>
    %cst_6 = arith.constant dense<0.000000e+00> : vector<8xf32>
    %12 = vector.multi_reduction <add>, %11, %cst_6 [1] : vector<8x256xf32> to vector<8xf32>
    %13 = vector.shape_cast %12 : vector<8xf32> to vector<8x1xf32>
    %cst_7 = arith.constant dense<0.000000e+00> : vector<1xf32>
    %14 = vector.multi_reduction <add>, %13, %cst_7 [0] : vector<8x1xf32> to vector<1xf32>
    %15 = vector.shape_cast %14 : vector<1xf32> to vector<1x1xf32>
    %16 = arith.mulf %7, %8 : vector<8x256xf32>
    %cst_8 = arith.constant dense<0.000000e+00> : vector<8xf32>
    %17 = vector.multi_reduction <add>, %16, %cst_8 [1] : vector<8x256xf32> to vector<8xf32>
    %18 = vector.shape_cast %17 : vector<8xf32> to vector<8x1xf32>
    %cst_9 = arith.constant dense<0.000000e+00> : vector<1xf32>
    %19 = vector.multi_reduction <add>, %18, %cst_9 [0] : vector<8x1xf32> to vector<1xf32>
    %20 = vector.shape_cast %19 : vector<1xf32> to vector<1x1xf32>
    %21 = arith.mulf %8, %8 : vector<8x256xf32>
    %cst_10 = arith.constant dense<0.000000e+00> : vector<8xf32>
    %22 = vector.multi_reduction <add>, %21, %cst_10 [1] : vector<8x256xf32> to vector<8xf32>
    %23 = vector.shape_cast %22 : vector<8xf32> to vector<8x1xf32>
    %cst_11 = arith.constant dense<0.000000e+00> : vector<1xf32>
    %24 = vector.multi_reduction <add>, %23, %cst_11 [0] : vector<8x1xf32> to vector<1xf32>
    %25 = vector.shape_cast %24 : vector<1xf32> to vector<1x1xf32>
    %26 = arith.maximumf %15, %20 : vector<1x1xf32>
    %27 = arith.subf %15, %26 : vector<1x1xf32>
    %28 = math.exp %27 : vector<1x1xf32>
    %29 = arith.subf %20, %26 : vector<1x1xf32>
    %30 = math.exp %29 : vector<1x1xf32>
    %31 = arith.addf %28, %30 : vector<1x1xf32>
    %32 = tpu.reciprocal %31 : vector<1x1xf32> -> vector<1x1xf32>
    %33 = arith.mulf %28, %32 : vector<1x1xf32>
    %34 = vector.broadcast %33 : vector<1x1xf32> to vector<8x256xf32>
    %35 = arith.mulf %34, %9 : vector<8x256xf32>
    %36 = arith.mulf %30, %32 : vector<1x1xf32>
    %37 = vector.broadcast %36 : vector<1x1xf32> to vector<8x256xf32>
    %38 = arith.mulf %37, %10 : vector<8x256xf32>
    %39 = arith.addf %35, %38 : vector<8x256xf32>
    %c0_12 = arith.constant 0 : index
    %c0_13 = arith.constant 0 : index
    %c0_14 = arith.constant 0 : index
    %40 = vector.load %arg4[%c0_12, %c0_13, %c0_14] : memref<1x16x256xf32, #tpu.memory_space<vmem>>, vector<1x8x256xf32>
    %41 = vector.shape_cast %40 : vector<1x8x256xf32> to vector<8x256xf32>
    %42 = vector.shape_cast %39 : vector<8x256xf32> to vector<1x8x256xf32>
    tpu.vector_store %arg4[%c0_12, %c0_13, %c0_14], %42 {strides = array<i32>} : memref<1x16x256xf32, #tpu.memory_space<vmem>>, vector<1x8x256xf32>,
    %43 = arith.maximumf %20, %25 : vector<1x1xf32>
    %44 = arith.subf %20, %43 : vector<1x1xf32>
    %45 = math.exp %44 : vector<1x1xf32>
    %46 = arith.subf %25, %43 : vector<1x1xf32>
    %47 = math.exp %46 : vector<1x1xf32>
    %48 = arith.addf %45, %47 : vector<1x1xf32>
    %49 = tpu.reciprocal %48 : vector<1x1xf32> -> vector<1x1xf32>
    %50 = arith.mulf %45, %49 : vector<1x1xf32>
    %51 = vector.broadcast %50 : vector<1x1xf32> to vector<8x256xf32>
    %52 = arith.mulf %51, %9 : vector<8x256xf32>
    %53 = arith.mulf %47, %49 : vector<1x1xf32>
    %54 = vector.broadcast %53 : vector<1x1xf32> to vector<8x256xf32>
    %55 = arith.mulf %54, %10 : vector<8x256xf32>
    %56 = arith.addf %52, %55 : vector<8x256xf32>
    %c0_15 = arith.constant 0 : index
    %c8 = arith.constant 8 : index
    %c0_16 = arith.constant 0 : index
    %57 = vector.load %arg4[%c0_15, %c8, %c0_16] : memref<1x16x256xf32, #tpu.memory_space<vmem>>, vector<1x8x256xf32>
    %58 = vector.shape_cast %57 : vector<1x8x256xf32> to vector<8x256xf32>
    %59 = vector.shape_cast %56 : vector<8x256xf32> to vector<1x8x256xf32>
    tpu.vector_store %arg4[%c0_15, %c8, %c0_16], %59 {strides = array<i32>} : memref<1x16x256xf32, #tpu.memory_space<vmem>>, vector<1x8x256xf32>,
    return
  }
  func.func @transform_0(%arg0: i32) -> (i32, i32, i32) {
    %c0_i32 = arith.constant 0 : i32
    %c0_i32_0 = arith.constant 0 : i32
    %c0_i32_1 = arith.constant 0 : i32
    return %arg0, %c0_i32, %c0_i32_0 : i32, i32, i32
  }
  func.func @transform_1(%arg0: i32) -> (i32, i32) {
    %c0_i32 = arith.constant 0 : i32
    %c0_i32_0 = arith.constant 0 : i32
    %c0_i32_1 = arith.constant 0 : i32
    return %c0_i32, %c0_i32_0 : i32, i32
  }
  func.func @transform_2(%arg0: i32) -> (i32, i32) {
    %c0_i32 = arith.constant 0 : i32
    %c0_i32_0 = arith.constant 0 : i32
    %c0_i32_1 = arith.constant 0 : i32
    return %c0_i32, %c0_i32_0 : i32, i32
  }
  func.func @transform_3(%arg0: i32) -> (i32, i32, i32) {
    %c0_i32 = arith.constant 0 : i32
    %c0_i32_0 = arith.constant 0 : i32
    %c0_i32_1 = arith.constant 0 : i32
    return %arg0, %c0_i32, %c0_i32_0 : i32, i32, i32
  }
}

</mosaic_0001>

<bundles_post_ra>
// kernel: tpu_custom_call.1
= control target key start
LH: loop header
LB: loop body
LE: loop exit
PB: predicated region body
PF: predicated region fallthrough
CT: control target
= control target key end

     0   :  { %8 = vsyncpa [#allocation3], 0  ;;  %s382_s0 = inlined_call_operand.hbm [shape: f32[1,16,256], index: 0, kind: input, shape index: {}]   ;;  %s383_s1 = inlined_call_operand.vmem [shape: f32[16,16], index: 1, kind: input, shape index: {}]   ;;  %s384_s2 = inlined_call_operand.vmem [shape: f32[16,1], index: 2, kind: input, shape index: {}]   ;;  %s385_s3 = inlined_call_operand.hbm [shape: f32[1,16,256], index: 3, kind: output, shape index: {}]  }
   0x1   :  { %9 = vsyncpa [#allocation4], 0  ;;  %s294_s12 = smov [#allocation2]   ;;  %s246_s16 = scalar_lea.hbm %s382_s0, 512 }
   0x2   :  { %s15_s13 = sshll.u32 %s294_s12, 4  ;;  %p247_p0 = scmp.ne.s32.totalorder %s382_s0, %s246_s16  ;;  %s16_s13 = int_to_ptr.vmem [resolvable:$true] %s15_s13 }
   0x3   :  { %p250_p1 = scmp.lt.u32.totalorder %s246_s16, %s382_s0 }
   0x5   :  { %p252_p2 = pnand %p250_p1, %p247_p0 }
   0x7   :  { %255 = shalt.err (!%p252_p2)
}
   0x8   :  { %s256_s21 = scalar_lea.vmem %s16_s13, 512  ;;  %p261_p4 = scmp.lt.s32.totalorder %s16_s13, %s16_s13 }
   0x9   :  { %p257_p3 = scmp.ne.s32.totalorder %s16_s13, %s256_s21  ;;  %p262_p5 = scmp.lt.s32.totalorder %s256_s21, %s256_s21 }
   0xb   :  { %p263_p6 = por %p262_p5, %p261_p4 }
   0xd   :  { %p264_p7 = pnand %p263_p6, %p257_p3 }
   0xf   :  { %267 = shalt.err (!%p264_p7)
}
  0x10   :  { %s295_s22 = smov 256   ;;  %s296_s23 = smov 16  }
  0x11   :  { %21 = dma.hbm_to_vmem [thread:$0]  %s382_s0, 512, %s16_s13, [#allocation3], %s295_s22, %s295_s22, %s296_s23  }
  0x12   :  { %290 = dma.done.wait [#allocation3], 512  }
  0x13   :  { %291 = vsyncadd [#allocation3], 4294966784  ;;  %v297_v0 = vmov 0.0   ;;  %v298_v1 = vmov 0   ;;  %v335_v2 = vld [vmem:[#allocation2 + $0x8] sm:$0xff]  ;;  %v337_v3 = vld [vmem:[#allocation2 + $0x18] sm:$0xff] }
  0x14   :  { %118 = vmatprep.mubr.f32.mxu0 %v297_v0  ;;  %124 = vmatprep.mubr.f32.mxu1 %v297_v0  ;;  %v339_v4 = vld [vmem:[#allocation2] sm:$0xff]  ;;  %v221_v5 = vpack.c.bf16 %v337_v3, %v335_v2  ;;  %v343_v6 = vld [vmem:[#allocation2 + $0x10] sm:$0xff]  ;;  %vm47_vm0 = vcmask 130048   ;;  %v30_v10 = vld [vmem:[%s383_s1 + $0x8] sm:$0xff] }
  0x15   :  { %233 = vset.pattern.permute.xlu0 %v298_v1  ;;  %v223_v7 = vpack.c.bf16 %v343_v6, %v339_v4  ;;  %v31_v8 = vld [vmem:[%s384_s2] sm:$0xff]  ;;  %v32_v11 = vld [vmem:[%s384_s2 + $0x8] sm:$0xff] }
  0x16   :  { %222 = vmatprep.subr.bf16.mxu0 %v221_v5  ;;  %225 = vmatprep.subr.bf16.mxu1 %v221_v5  ;;  %v29_v9 = vld [vmem:[%s383_s1] sm:$0xff]  ;;  %s299_s1 = smov [#allocation5]  }
  0x17   :  { %224 = vmatpush1.bf16.msra.mxu0 %v223_v7  ;;  %226 = vmatpush1.bf16.msra.mxu1 %v223_v7  ;;  %s207_s2 = sshll.u32 %s299_s1, 4  ;;  %s208_s2 = int_to_ptr.vmem [resolvable:$true] %s207_s2 }
  0x18   :  { %39 = vperm.xlu0 %233, %v31_v8   ;;  %s268_s6 = scalar_lea.vmem %s208_s2, 512  ;;  %p273_p9 = scmp.lt.s32.totalorder %s208_s2, %s208_s2 }
  0x19   :  { %p269_p8 = scmp.ne.s32.totalorder %s208_s2, %s268_s6  ;;  %p274_p10 = scmp.lt.s32.totalorder %s268_s6, %s268_s6 }
  0x1a   :  { %219 = vmatmul.mubr.msk.f32.vlgmr.msra.gmra.mrb[0].mxu0 %vm47_vm0, %v29_v9  ;;  %220 = vmatmul.mubr.msk.f32.vlgmr.msra.gmra.mrb[0].mxu1 %vm47_vm0, %v30_v10 }
  0x1b   :  { %p275_p11 = por %p274_p10, %p273_p9 }
  0x1c   :  { %44 = vperm.xlu0 %233, %v32_v11  }
  0x1d   :  { %p276_p12 = pnand %p275_p11, %p269_p8 }
  0x97   :  { %v40_v12 = vpop.permute.xlu0 %39 }
  0x9b   :  { %v45_v13 = vpop.permute.xlu0 %44 }
  0xed   :  { %v120_v14 = vpop.f32.mrb[0].mxu0  ;;  %v126_v15 = vpop.f32.mrb[0].mxu1 }
  0xee   :  { %v121_v16 = vadd.f32 %v120_v14, %v40_v12  ;;  %v127_v17 = vadd.f32 %v126_v15, %v45_v13  ;;  %v122_v18 = vpop.f32.mrb[1].mxu0  ;;  %v128_v19 = vpop.f32.mrb[1].mxu1 }
  0xef   :  { %v123_v20 = vadd.f32 %v122_v18, %v40_v12  ;;  %v129_v21 = vadd.f32 %v128_v19, %v45_v13 }
  0xf0   :  { %v142_v22 = vmul.f32 %v127_v17, %v121_v16  ;;  %v153_v23 = vmul.f32 %v127_v17, %v127_v17  ;;  %v131_v24 = vmul.f32 %v121_v16, %v121_v16 }
  0xf1   :  { %v143_v25 = vmul.f32 %v129_v21, %v123_v20  ;;  %v154_v26 = vmul.f32 %v129_v21, %v129_v21  ;;  %v132_v27 = vmul.f32 %v123_v20, %v123_v20 }
  0xf3   :  { %v155_v28 = vadd.f32 %v154_v26, %v153_v23  ;;  %v133_v29 = vadd.f32 %v132_v27, %v131_v24  ;;  %v144_v30 = vadd.f32 %v143_v25, %v142_v22 }
  0xf5   :  { %156 = vadd.xlane.f32.xlu0 %v155_v28  ;;  %134 = vadd.xlane.f32.xlu1 %v133_v29 }
  0xf9   :  { %145 = vadd.xlane.f32.xlu1 %v144_v30 }
 0x182   :  { %v157_v31 = vpop.xlane.xlu0 %156  ;;  %v135_v32 = vpop.xlane.xlu1 %134 }
 0x183   :  { %v158_v33 = vrot.slane %v157_v31, 4  ;;  %v136_v34 = vrot.slane %v135_v32, 4 }
 0x185   :  { %v159_v35 = vadd.f32 %v158_v33, %v157_v31  ;;  %v137_v36 = vadd.f32 %v136_v34, %v135_v32 }
 0x186   :  { %v146_v37 = vpop.xlane.xlu1 %145 }
 0x187   :  { %v160_v38 = vrot.slane %v159_v35, 2  ;;  %v138_v39 = vrot.slane %v137_v36, 2  ;;  %v147_v40 = vrot.slane %v146_v37, 4 }
 0x189   :  { %v161_v41 = vadd.f32 %v160_v38, %v159_v35  ;;  %v139_v42 = vadd.f32 %v138_v39, %v137_v36  ;;  %v148_v43 = vadd.f32 %v147_v40, %v146_v37 }
 0x18b   :  { %v149_v44 = vrot.slane %v148_v43, 2  ;;  %v162_v45 = vrot.slane %v161_v41, 1  ;;  %v140_v46 = vrot.slane %v139_v42, 1 }
 0x18d   :  { %v150_v47 = vadd.f32 %v149_v44, %v148_v43  ;;  %v163_v49 = vadd.f32 %v162_v45, %v161_v41  ;;  %v141_v50 = vadd.f32 %v140_v46, %v139_v42 }
 0x18f   :  { %v151_v48 = vrot.slane %v150_v47, 1 }
 0x191   :  { %v152_v51 = vadd.f32 %v151_v48, %v150_v47 }
 0x193   :  { %v164_v52 = vmax.f32 %v141_v50, %v152_v51  ;;  %v183_v53 = vmax.f32 %v152_v51, %v163_v49 }
 0x195   :  { %v165_v54 = vsub.f32 %v141_v50, %v164_v52  ;;  %v168_v55 = vsub.f32 %v152_v51, %v164_v52  ;;  %v184_v56 = vsub.f32 %v152_v51, %v183_v53  ;;  %v187_v57 = vsub.f32 %v163_v49, %v183_v53 }
 0x197   :  { %v166_v58 = vmul.f32 1.442695, %v165_v54  ;;  %v169_v59 = vmul.f32 1.442695, %v168_v55  ;;  %v185_v60 = vmul.f32 1.442695, %v184_v56 }
 0x198   :  { %v188_v61 = vmul.f32 1.442695, %v187_v57 }
 0x199   :  { %234 = vpow2.f32 %v166_v58 }
 0x19a   :  { %236 = vpow2.f32 %v169_v59 }
 0x19b   :  { %238 = vpow2.f32 %v185_v60 }
 0x19c   :  { %240 = vpow2.f32 %v188_v61 }
 0x1a3   :  { %v235_v62 = vpop.eup %234 }
 0x1a4   :  { %v237_v63 = vpop.eup %236 }
 0x1a5   :  { %v239_v0 = vpop.eup %238  ;;  %v171_v1 = vadd.f32 %v237_v63, %v235_v62 }
 0x1a6   :  { %v241_v5 = vpop.eup %240 }
 0x1a7   :  { %242 = vrcp.f32 %v171_v1  ;;  %v190_v7 = vadd.f32 %v241_v5, %v239_v0 }
 0x1a9   :  { %244 = vrcp.f32 %v190_v7 }
 0x1b1   :  { %v243_v8 = vpop.eup %242 }
 0x1b2   :  { %v173_v9 = vmul.f32 %v243_v8, %v235_v62  ;;  %v176_v10 = vmul.f32 %v243_v8, %v237_v63 }
 0x1b3   :  { %v245_v11 = vpop.eup %244 }
 0x1b4   :  { %v174_v12 = vmul.f32 %v173_v9, %v339_v4  ;;  %v175_v13 = vmul.f32 %v173_v9, %v335_v2  ;;  %v177_v14 = vmul.f32 %v176_v10, %v343_v6  ;;  %v178_v15 = vmul.f32 %v176_v10, %v337_v3 }
 0x1b5   :  { %v192_v16 = vmul.f32 %v245_v11, %v239_v0  ;;  %v195_v17 = vmul.f32 %v245_v11, %v241_v5 }
 0x1b6   :  { %v179_v18 = vadd.f32 %v177_v14, %v174_v12  ;;  %v180_v19 = vadd.f32 %v178_v15, %v175_v13 }
 0x1b7   :  { %v193_v20 = vmul.f32 %v192_v16, %v339_v4  ;;  %v194_v21 = vmul.f32 %v192_v16, %v335_v2  ;;  %v196_v22 = vmul.f32 %v195_v17, %v343_v6  ;;  %v197_v23 = vmul.f32 %v195_v17, %v337_v3 }
 0x1b8   :  { %181 = vst [vmem:[#allocation5] sm:$0xff] %v179_v18  ;;  %182 = vst [vmem:[#allocation5 + $0x8] sm:$0xff] %v180_v19 }
 0x1b9   :  { %v198_v24 = vadd.f32 %v196_v22, %v193_v20  ;;  %v199_v25 = vadd.f32 %v197_v23, %v194_v21 }
 0x1bb   :  { %200 = vst [vmem:[#allocation5 + $0x10] sm:$0xff] %v198_v24  ;;  %201 = vst [vmem:[#allocation5 + $0x18] sm:$0xff] %v199_v25 }
 0x1bc   :  { %279 = shalt.err (!%p276_p12)
}
 0x1bd   :  { %s280_s9 = scalar_lea.hbm %s385_s3, 512 }
 0x1be   :  { %p281_p13 = scmp.ne.s32.totalorder %s385_s3, %s280_s9  ;;  %p284_p0 = scmp.lt.u32.totalorder %s280_s9, %s385_s3 }
 0x1c0   :  { %p286_p1 = pnand %p284_p0, %p281_p13 }
 0x1c2   :  { %289 = shalt.err (!%p286_p1)
}
 0x1c3   :  { %213 = dma.vmem_to_hbm [thread:$0]  %s208_s2, 512, %s385_s3, [#allocation4], %s295_s22, %s295_s22, %s296_s23  }
 0x1c4   :  { %292 = dma.done.wait [#allocation4], 512  }
 0x1c5   :  { %293 = vsyncadd [#allocation4], 4294966784 }
 0x1c6   :  { %217 = vsyncpa [#allocation3], 1 }
 0x1c7   :  { %218 = vsyncpa [#allocation4], 1 }

</bundles_post_ra>
